<compile_context>
chip_gen: v7x
topology: tpu7x:2x2x1
jax: 0.10.0
libtpu: 0.0.40
codegen_flags: <defaults>
</compile_context>

<pallas_src>
import functools

import jax
import jax.numpy as jnp
from jax.experimental import pallas as pl
from jax.experimental.pallas import tpu as pltpu


def _round_up(x, m):
    return ((x + m - 1) // m) * m


def _make_kernel(c_in, use_mxu):
    def kernel(x_ref, w_ref, b_ref, o_ref):
        # x_ref: (C_in, THW)   spatial tile of one sample (leading N squeezed)
        # w_ref: (C_out, C_in) 1x1-conv weight with BN scale pre-folded
        # b_ref: (C_out, 1)    folded BN bias = beta - mean * scale
        # o_ref: (C_out, THW)  output tile (lane-dense: THW % 128 == 0)
        x = x_ref[...]
        w = w_ref[...]
        if use_mxu:
            y = jnp.dot(w, x, preferred_element_type=jnp.float32)
        else:
            # Tiny channels: MXU depth/width would be ~4/256 filled, so do the
            # contraction as C_in broadcast FMAs on the VPU instead.
            y = w[:, 0:1].astype(jnp.float32) * x[0:1, :].astype(jnp.float32)
            for c in range(1, c_in):
                y = y + (w[:, c:c + 1].astype(jnp.float32)
                         * x[c:c + 1, :].astype(jnp.float32))
        y = y + b_ref[...]
        o_ref[...] = jnp.maximum(y, 0.0).astype(o_ref.dtype)

    return kernel


def conv_bn_relu(x_nchw, w_oihw, gamma, beta, running_mean, running_var,
                 eps=1e-5, t_hw=2048):
    """1x1 conv (stride 1, pad 0, no conv bias) + BN (eval) + ReLU, NCHW in/out."""
    N, C_in, H, W = x_nchw.shape
    C_out = w_oihw.shape[0]
    assert w_oihw.shape == (C_out, C_in, 1, 1)

    HW = H * W
    # Lane-dense spatial tile: multiple of 128, capped by the (rounded) H*W.
    t_hw = max(128, min(t_hw, _round_up(HW, 128)))
    HW_pad = _round_up(HW, t_hw)

    # NCHW -> (N, C_in, H*W): pure reshape, no transpose / HBM round trip.
    x3d = x_nchw.reshape(N, C_in, HW)
    if HW_pad != HW:
        # Zero padding is harmless: padded columns produce relu(bias) and are
        # sliced off below.
        x3d = jnp.pad(x3d, ((0, 0), (0, 0), (0, HW_pad - HW)))

    # Fold BatchNorm (inference) into the weight and a per-channel bias.
    scale = gamma / jnp.sqrt(running_var + eps)
    w2d = (w_oihw.reshape(C_out, C_in) * scale[:, None]).astype(jnp.float32)
    bias = (beta - running_mean * scale).reshape(C_out, 1).astype(jnp.float32)

    grid = (N, HW_pad // t_hw)
    use_mxu = min(C_in, C_out) > 16
    kernel = _make_kernel(C_in, use_mxu)

    # Explicit scoped-VMEM budget: double-buffered in/out tiles + params,
    # capped at 48 MiB so it is also safe on v7x's 64 MiB physical VMEM.
    itemsize = x3d.dtype.itemsize
    tile_bytes = 2 * (C_in * t_hw * itemsize + C_out * t_hw * itemsize)
    tile_bytes += 2 * (C_out * C_in + C_out) * 4
    vmem_limit = int(min(max(4 * tile_bytes, 16 * 1024 * 1024),
                         48 * 1024 * 1024))

    out3d = pl.pallas_call(
        kernel,
        out_shape=jax.ShapeDtypeStruct((N, C_out, HW_pad), x3d.dtype),
        grid_spec=pltpu.PrefetchScalarGridSpec(
            num_scalar_prefetch=0,
            grid=grid,
            in_specs=[
                # Leading N dim squeezed out of the kernel view.
                pl.BlockSpec((None, C_in, t_hw), lambda n, s: (n, 0, s)),
                pl.BlockSpec((C_out, C_in), lambda n, s: (0, 0)),
                pl.BlockSpec((C_out, 1), lambda n, s: (0, 0)),
            ],
            out_specs=pl.BlockSpec((None, C_out, t_hw), lambda n, s: (n, 0, s)),
        ),
        compiler_params=pltpu.CompilerParams(
            dimension_semantics=("parallel", "parallel"),
            vmem_limit_bytes=vmem_limit),
    )(x3d, w2d, bias)

    # (N, C_out, HW_pad) -> NCHW (drop spatial padding; reshape is free).
    return out3d[:, :, :HW].reshape(N, C_out, H, W)


if __name__ == "__main__":
    # ConvBNReLU(in_channel=4, out_channel=8) with defaults:
    # kernel_size=1, stride=1, padding=0, groups=1, bias='auto' (-> no conv
    # bias since a norm layer is present), norm = BatchNorm2d, act = ReLU.
    N, C_in, C_out, H, W = 2, 4, 8, 16, 16

    key = jax.random.PRNGKey(0)
    kx, kw, kg, kb, km, kv = jax.random.split(key, 6)

    x = jax.random.normal(kx, (N, C_in, H, W), dtype=jnp.float32)
    w = jax.random.normal(kw, (C_out, C_in, 1, 1), dtype=jnp.float32) * 0.1
    gamma = 1.0 + 0.1 * jax.random.normal(kg, (C_out,), dtype=jnp.float32)
    beta = 0.1 * jax.random.normal(kb, (C_out,), dtype=jnp.float32)
    running_mean = 0.1 * jax.random.normal(km, (C_out,), dtype=jnp.float32)
    running_var = jnp.abs(
        1.0 + 0.1 * jax.random.normal(kv, (C_out,), dtype=jnp.float32))

    fn = jax.jit(functools.partial(conv_bn_relu, eps=1e-5))
    out = fn(x, w, gamma, beta, running_mean, running_var)
    jax.block_until_ready(out)

    # Pure-JAX reference (same math, no Pallas).
    eps = 1e-5
    conv = jnp.einsum("nchw,oc->nohw", x, w.reshape(C_out, C_in))
    bn = (conv - running_mean[None, :, None, None]) / jnp.sqrt(
        running_var[None, :, None, None] + eps)
    ref = jnp.maximum(bn * gamma[None, :, None, None]
                      + beta[None, :, None, None], 0.0)

    assert out.shape == (N, C_out, H, W)
    assert jnp.allclose(out, ref, atol=1e-4, rtol=1e-4)

    print("KERNEL_OK")
</pallas_src>

<mosaic_0001>
module attributes {stable_mosaic.version = 11 : i64} {
  func.func @kernel(%arg0: i32, %arg1: i32, %arg2: memref<1x4x256xf32, #tpu.memory_space<vmem>>, %arg3: memref<8x4xf32, #tpu.memory_space<vmem>>, %arg4: memref<8x1xf32, #tpu.memory_space<vmem>>, %arg5: memref<1x8x256xf32, #tpu.memory_space<vmem>>) attributes {dimension_semantics = [#tpu.dimension_semantics<parallel>, #tpu.dimension_semantics<parallel>], iteration_bounds = array<i64: 2, 1>, scalar_prefetch = 0 : i64, scratch_operands = 0 : i64, tpu.core_type = #tpu.core_type<tc>, window_params = [{transform_indices = @transform_0, window_bounds = array<i64: 1, 4, 256>}, {pipeline_mode = #tpu.pipeline_mode<synchronous>, transform_indices = @transform_1, window_bounds = array<i64: 8, 4>}, {pipeline_mode = #tpu.pipeline_mode<synchronous>, transform_indices = @transform_2, window_bounds = array<i64: 8, 1>}, {transform_indices = @transform_3, window_bounds = array<i64: 1, 8, 256>}]} {
    %c0 = arith.constant 0 : index
    %c0_0 = arith.constant 0 : index
    %c0_1 = arith.constant 0 : index
    %0 = vector.load %arg2[%c0, %c0_0, %c0_1] : memref<1x4x256xf32, #tpu.memory_space<vmem>>, vector<1x4x256xf32>
    %1 = vector.shape_cast %0 : vector<1x4x256xf32> to vector<4x256xf32>
    %c0_2 = arith.constant 0 : index
    %c0_3 = arith.constant 0 : index
    %2 = vector.load %arg3[%c0_2, %c0_3] : memref<8x4xf32, #tpu.memory_space<vmem>>, vector<8x4xf32>
    %3 = vector.extract_strided_slice %2 {offsets = [0, 0], sizes = [8, 1], strides = [1, 1]} : vector<8x4xf32> to vector<8x1xf32>
    %4 = vector.extract_strided_slice %1 {offsets = [0, 0], sizes = [1, 256], strides = [1, 1]} : vector<4x256xf32> to vector<1x256xf32>
    %5 = vector.broadcast %3 : vector<8x1xf32> to vector<8x256xf32>
    %6 = vector.broadcast %4 : vector<1x256xf32> to vector<8x256xf32>
    %7 = arith.mulf %5, %6 : vector<8x256xf32>
    %8 = vector.extract_strided_slice %2 {offsets = [0, 1], sizes = [8, 1], strides = [1, 1]} : vector<8x4xf32> to vector<8x1xf32>
    %9 = vector.extract_strided_slice %1 {offsets = [1, 0], sizes = [1, 256], strides = [1, 1]} : vector<4x256xf32> to vector<1x256xf32>
    %10 = vector.broadcast %8 : vector<8x1xf32> to vector<8x256xf32>
    %11 = vector.broadcast %9 : vector<1x256xf32> to vector<8x256xf32>
    %12 = arith.mulf %10, %11 : vector<8x256xf32>
    %13 = arith.addf %7, %12 : vector<8x256xf32>
    %14 = vector.extract_strided_slice %2 {offsets = [0, 2], sizes = [8, 1], strides = [1, 1]} : vector<8x4xf32> to vector<8x1xf32>
    %15 = vector.extract_strided_slice %1 {offsets = [2, 0], sizes = [1, 256], strides = [1, 1]} : vector<4x256xf32> to vector<1x256xf32>
    %16 = vector.broadcast %14 : vector<8x1xf32> to vector<8x256xf32>
    %17 = vector.broadcast %15 : vector<1x256xf32> to vector<8x256xf32>
    %18 = arith.mulf %16, %17 : vector<8x256xf32>
    %19 = arith.addf %13, %18 : vector<8x256xf32>
    %20 = vector.extract_strided_slice %2 {offsets = [0, 3], sizes = [8, 1], strides = [1, 1]} : vector<8x4xf32> to vector<8x1xf32>
    %21 = vector.extract_strided_slice %1 {offsets = [3, 0], sizes = [1, 256], strides = [1, 1]} : vector<4x256xf32> to vector<1x256xf32>
    %22 = vector.broadcast %20 : vector<8x1xf32> to vector<8x256xf32>
    %23 = vector.broadcast %21 : vector<1x256xf32> to vector<8x256xf32>
    %24 = arith.mulf %22, %23 : vector<8x256xf32>
    %25 = arith.addf %19, %24 : vector<8x256xf32>
    %c0_4 = arith.constant 0 : index
    %c0_5 = arith.constant 0 : index
    %26 = vector.load %arg4[%c0_4, %c0_5] : memref<8x1xf32, #tpu.memory_space<vmem>>, vector<8x1xf32>
    %27 = vector.broadcast %26 : vector<8x1xf32> to vector<8x256xf32>
    %28 = arith.addf %25, %27 : vector<8x256xf32>
    %cst = arith.constant 0.000000e+00 : f32
    %29 = vector.broadcast %cst : f32 to vector<8x256xf32>
    %30 = arith.maximumf %28, %29 : vector<8x256xf32>
    %c0_6 = arith.constant 0 : index
    %c0_7 = arith.constant 0 : index
    %c0_8 = arith.constant 0 : index
    %31 = vector.load %arg5[%c0_6, %c0_7, %c0_8] : memref<1x8x256xf32, #tpu.memory_space<vmem>>, vector<1x8x256xf32>
    %32 = vector.shape_cast %31 : vector<1x8x256xf32> to vector<8x256xf32>
    %33 = vector.shape_cast %30 : vector<8x256xf32> to vector<1x8x256xf32>
    tpu.vector_store %arg5[%c0_6, %c0_7, %c0_8], %33 {strides = array<i32>} : memref<1x8x256xf32, #tpu.memory_space<vmem>>, vector<1x8x256xf32>,
    return
  }
  func.func @transform_0(%arg0: i32, %arg1: i32) -> (i32, i32, i32) {
    %c0_i32 = arith.constant 0 : i32
    %c0_i32_0 = arith.constant 0 : i32
    return %arg0, %c0_i32, %arg1 : i32, i32, i32
  }
  func.func @transform_1(%arg0: i32, %arg1: i32) -> (i32, i32) {
    %c0_i32 = arith.constant 0 : i32
    %c0_i32_0 = arith.constant 0 : i32
    %c0_i32_1 = arith.constant 0 : i32
    return %c0_i32, %c0_i32_0 : i32, i32
  }
  func.func @transform_2(%arg0: i32, %arg1: i32) -> (i32, i32) {
    %c0_i32 = arith.constant 0 : i32
    %c0_i32_0 = arith.constant 0 : i32
    %c0_i32_1 = arith.constant 0 : i32
    return %c0_i32, %c0_i32_0 : i32, i32
  }
  func.func @transform_3(%arg0: i32, %arg1: i32) -> (i32, i32, i32) {
    %c0_i32 = arith.constant 0 : i32
    %c0_i32_0 = arith.constant 0 : i32
    return %arg0, %c0_i32, %arg1 : i32, i32, i32
  }
}

</mosaic_0001>

<bundles_post_ra>
// kernel: conv_bn_relu.1
= control target key start
LH: loop header
LB: loop body
LE: loop exit
PB: predicated region body
PF: predicated region fallthrough
CT: control target
= control target key end

     0   :  { %s510_s12 = smov 0   ;;  %s512_s13 = smov 0   ;;  %s553_s0 = inlined_call_operand.vmem [shape: f32[2,4,256], index: 0, kind: input, shape index: {}]   ;;  %s554_s1 = inlined_call_operand.vmem [shape: f32[8,4], index: 1, kind: input, shape index: {}]   ;;  %s555_s2 = inlined_call_operand.vmem [shape: f32[8,1], index: 2, kind: input, shape index: {}]   ;;  %s556_s3 = inlined_call_operand.vmem [shape: f32[2,8,256], index: 3, kind: output, shape index: {}]  }
   0x1   :  { %s514_s14 = smov 0  }
   0x2 LB: > { %s25_s15 = sadd.s32 1, %s480_s13  ;;  %p419_p0 = scmp.ge.s32.totalorder %s484_s14, 1  ;;  %s484_s14 = sphi %s514_s14, %s13_s14   ;;  %s480_s13 = sphi %s512_s13, %s558_s13   ;;  %s476_s12 = sphi %s510_s12, %s557_s12  }
   0x3   : > { %p27_p1 = scmp.ge.s32.totalorder %s25_s15, 2  ;;  %p158_p2 = scmp.lt.s32.totalorder %s484_s14, 3 }
   0x5   : > { %s560_s15 = smov (%p27_p1, %s25_s15), 0  ;;  %p159_p3 = pnand %p419_p0, %p158_p2 }
   0x6   : > { %v211_v0 = vld [vmem:[%s554_s1] sm:$0xff] (!%p159_p3)  ;;  %v486_v1 = vmov (!%p159_p3), 0   ;;  %v487_v2 = vmov (!%p159_p3), 2   ;;  %v488_v3 = vmov (!%p159_p3), 1   ;;  %v489_v4 = vmov (!%p159_p3), 3   ;;  %p191_p4 = scmp.lt.s32.totalorder (!%p159_p3), %s476_s12, 1 }
   0x7   : > { %162 = sbr.rel (%p159_p3) target bundleno = 154 (0x9a), region = 32  ;;  %456 = vset.pattern.permute.xlu0 (!%p159_p3), %v486_v1  ;;  %458 = vset.pattern.permute.xlu1 (!%p159_p3), %v487_v2  ;;  %v316_v5 = vld [vmem:[%s555_s2] sm:$0xff] (!%p159_p3)  ;;  %v218_v6 = vlaneseq (!%p159_p3) }
   0x8   : > { %214 = vperm.xlu0 (!%p159_p3), %456, %v211_v0   ;;  %265 = vperm.xlu1 (!%p159_p3), %458, %v211_v0  }
   0x9   : > { %v219_v7 = vshrl.u32 (!%p159_p3), %v218_v6, 7 }
   0xb   : > { %v220_v8 = vsub.s32 (!%p159_p3), 0, %v219_v7  ;;  %v224_v9 = vsub.s32 (!%p159_p3), 4, %v219_v7  ;;  %v244_v10 = vsub.s32 (!%p159_p3), 1, %v219_v7  ;;  %v248_v11 = vsub.s32 (!%p159_p3), 5, %v219_v7 }
   0xc   : > { %457 = vset.pattern.permute.xlu0 (!%p159_p3), %v488_v3  ;;  %459 = vset.pattern.permute.xlu1 (!%p159_p3), %v489_v4  ;;  %v270_v13 = vsub.s32 (!%p159_p3), 2, %v219_v7  ;;  %v274_v14 = vsub.s32 (!%p159_p3), 6, %v219_v7  ;;  %v296_v15 = vsub.s32 (!%p159_p3), 3, %v219_v7  ;;  %v300_v16 = vsub.s32 (!%p159_p3), 7, %v219_v7 }
   0xd   : > { %239 = vperm.xlu0 (!%p159_p3), %457, %v211_v0   ;;  %291 = vperm.xlu1 (!%p159_p3), %459, %v211_v0  }
   0xe   : > { %s562_s12 = smov (!%p191_p4, %s476_s12), 1 }
   0xf   : > { %s426_s20 = sshll.u32 %s562_s12, 3  ;;  %s427_s24 = sshll.u32 %s562_s12, 4 }
  0x10   : > { %s198_s23 = scalar_lea.vmem %s553_s0, %s426_s20  ;;  %s208_s27 = scalar_lea.vmem %s556_s3, %s427_s24 }
  0x11   : > { %460 = vset.pattern.permute.xlu1 %v486_v1  ;;  %461 = vset.pattern.permute.xlu0 %v486_v1  ;;  %v210_v12 = vld [vmem:[%s198_s23] sm:$0xff] }
  0x12   : > { %319 = vperm.xlu1 %460, %v316_v5   ;;  %v221_v17 = vrot.slane %v210_v12, %v220_v8  ;;  %v225_v18 = vrot.slane %v210_v12, %v224_v9  ;;  %v245_v19 = vrot.slane %v210_v12, %v244_v10  ;;  %v249_v20 = vrot.slane %v210_v12, %v248_v11 }
  0x13   : > { %v271_v21 = vrot.slane %v210_v12, %v270_v13  ;;  %v275_v22 = vrot.slane %v210_v12, %v274_v14  ;;  %v297_v25 = vrot.slane %v210_v12, %v296_v15  ;;  %v301_v26 = vrot.slane %v210_v12, %v300_v16 }
  0x14   : > { %v231_v27 = vrot.slane %v221_v17, %v220_v8  ;;  %v235_v28 = vrot.slane %v225_v18, %v220_v8  ;;  %v255_v29 = vrot.slane %v245_v19, %v244_v10  ;;  %v259_v30 = vrot.slane %v249_v20, %v244_v10 }
  0x15   : > { %v281_v31 = vrot.slane %v271_v21, %v270_v13  ;;  %v285_v32 = vrot.slane %v275_v22, %v270_v13  ;;  %v307_v33 = vrot.slane %v297_v25, %v296_v15  ;;  %v311_v34 = vrot.slane %v301_v26, %v296_v15 }
  0x87   : > { %v215_v23 = vpop.permute.xlu0 %214  ;;  %v266_v24 = vpop.permute.xlu1 %265 }
  0x88   : > { %v236_v37 = vmul.f32 %v231_v27, %v215_v23  ;;  %v237_v38 = vmul.f32 %v235_v28, %v215_v23  ;;  %v286_v41 = vmul.f32 %v281_v31, %v266_v24  ;;  %v287_v42 = vmul.f32 %v285_v32, %v266_v24 }
  0x8c   : > { %v240_v35 = vpop.permute.xlu0 %239  ;;  %v292_v36 = vpop.permute.xlu1 %291 }
  0x8d   : > { %v260_v39 = vmul.f32 %v255_v29, %v240_v35  ;;  %v261_v40 = vmul.f32 %v259_v30, %v240_v35  ;;  %v312_v45 = vmul.f32 %v307_v33, %v292_v36  ;;  %v313_v46 = vmul.f32 %v311_v34, %v292_v36 }
  0x8f   : > { %v262_v43 = vadd.f32 %v260_v39, %v236_v37  ;;  %v263_v44 = vadd.f32 %v261_v40, %v237_v38 }
  0x91   : > { %v288_v47 = vadd.f32 %v286_v41, %v262_v43  ;;  %v289_v48 = vadd.f32 %v287_v42, %v263_v44  ;;  %v320_v49 = vpop.permute.xlu1 %319 }
  0x93   : > { %v314_v50 = vadd.f32 %v312_v45, %v288_v47  ;;  %v315_v51 = vadd.f32 %v313_v46, %v289_v48 }
  0x95   : > { %v322_v52 = vadd.f32 %v320_v49, %v314_v50  ;;  %v323_v53 = vadd.f32 %v320_v49, %v315_v51 }
  0x97   : > { %v324_v54 = vmax.f32 %v322_v52, 0.0  ;;  %v325_v55 = vmax.f32 %v323_v53, 0.0 }
  0x99   : > { %326 = vst [vmem:[%s208_s27] sm:$0xff] %v324_v54  ;;  %327 = vst [vmem:[%s208_s27 + $0x8] sm:$0xff] %v325_v55 }
  0x9a PF: > { %s13_s14 = sadd.s32 1, %s484_s14   ;;  %s557_s12 = smov %s480_s13 }
  0x9b   : > { %p10_p5 = scmp.ge.s32.totalorder %s13_s14, 4   ;;  %s558_s13 = smov %s560_s15 }
  0x9d   :  { %12 = sbr.rel (!%p10_p5) target bundleno = 2 (0x2), region = 62 }

</bundles_post_ra>
